<compile_context>
chip_gen: v7x
topology: tpu7x:2x2x1
jax: 0.10.0
libtpu: 0.0.40
codegen_flags: <defaults>
</compile_context>

<pallas_src>
import functools

import jax
import jax.numpy as jnp
from jax.experimental import pallas as pl
from jax.experimental.pallas import tpu as pltpu


def _round_up(x, m):
    return (x + m - 1) // m * m


def _conv_rows(roles, values, wcr, wcv):
    # Conv2d(1, F, (1, 2E)) over the feature dim == matmul; split into the
    # roles-half and values-half so no [B*A, 2E] concat is ever materialized.
    return (jnp.dot(roles, wcr, preferred_element_type=jnp.float32) +
            jnp.dot(values, wcv, preferred_element_type=jnp.float32))


def _stats_kernel(roles_ref, values_ref, wcr_ref, wcv_ref, psum_ref, *, total_rows):
    """Per-tile partial sum / sum-of-squares of the conv activations."""
    conv = _conv_rows(roles_ref[...], values_ref[...], wcr_ref[...], wcv_ref[...])
    tile_rows = conv.shape[0]
    row0 = pl.program_id(0) * tile_rows
    rid = row0 + jax.lax.broadcasted_iota(jnp.int32, (tile_rows, 1), 0)
    valid = (rid < total_rows).astype(jnp.float32)             # mask padded rows
    conv_v = conv * valid
    s = jnp.sum(conv_v, axis=0, keepdims=True)                 # [1, F]
    ss = jnp.sum(conv_v * conv, axis=0, keepdims=True)         # [1, F]
    psum_ref[0] = jnp.concatenate([s, ss], axis=0)             # [2, F]


def _nalp_kernel(roles_ref, values_ref, wcr_ref, wcv_ref, scale_ref, shift_ref,
                 wg_ref, bg_ref, wf_ref, bf_ref, out_ref, *, arity, fc_dim):
    conv = _conv_rows(roles_ref[...], values_ref[...], wcr_ref[...], wcv_ref[...])
    # BatchNorm with precomputed global (batch) scale/shift, then ReLU.
    m = jnp.maximum(conv * scale_ref[...] + shift_ref[...], 0.0)        # [T*A, F]

    # Fused g_FCN: single [F, 2D] matmul.  First D lanes = weight half that
    # multiplies the "first" (role j) member of each pair, last D lanes = the
    # half for the "second" (role i) member.
    g = jnp.dot(m.astype(wg_ref.dtype), wg_ref[...],
                preferred_element_type=jnp.float32)                     # [T*A, 2D]
    rows = g.shape[0]
    tb = rows // arity
    g = g.reshape(tb, arity, 2 * fc_dim)
    g1 = [g[:, j, :fc_dim] for j in range(arity)]                       # per-j slices
    g2 = [g[:, i, fc_dim:] + bg_ref[...] for i in range(arity)]         # bias hoisted

    # pair(b, i*A + j) = cat(m[b, j], m[b, i]) -> relu -> min over all pairs.
    minv = None
    for i in range(arity):
        for j in range(arity):
            v = jnp.maximum(g1[j] + g2[i], 0.0)                         # [T, D]
            minv = v if minv is None else jnp.minimum(minv, v)

    # f_FCN (output width 1): VPU multiply + lane reduction, not an MXU matmul.
    score = jnp.sum(minv * wf_ref[...], axis=-1, keepdims=True) + bf_ref[...]
    out_ref[...] = score.astype(out_ref.dtype)                          # [T, 1]


def nalp_forward(x, params, *, embedding_size, tile_batch=1024):
    b, cols = x.shape
    arity = cols // 2
    e = embedding_size
    f = params["wc_roles"].shape[1]
    d = params["bg"].shape[1]

    # --- batch padding / tiling (multiples of 16 for bf16 sublane packing) ---
    b_pad = _round_up(b, 16)
    tile_b = min(_round_up(tile_batch, 16), b_pad)
    b_pad = _round_up(b_pad, tile_b)
    num_tiles = b_pad // tile_b
    tile_rows = tile_b * arity

    # --- embedding gather (plain JAX); padded ids are 0 == #PAD_TOKEN --------
    # TODO(synk): move the gather in-kernel (PrefetchScalarGridSpec ids in SMEM
    # + pl.Element row-gather BlockSpecs) to avoid the XLA gather round-trip.
    x_pad = jnp.zeros((b_pad, cols), x.dtype).at[:b].set(x)
    roles_ids = x_pad[:, 0::2].reshape(-1)
    values_ids = x_pad[:, 1::2].reshape(-1)
    roles = jnp.take(params["emb_roles"], roles_ids, axis=0).astype(jnp.bfloat16)
    values = jnp.take(params["emb_values"], values_ids, axis=0).astype(jnp.bfloat16)

    wcr = params["wc_roles"].astype(jnp.bfloat16)           # [E, F]
    wcv = params["wc_values"].astype(jnp.bfloat16)          # [E, F]
    wg = params["wg"].astype(jnp.bfloat16)                  # [F, 2D]
    gamma, beta = params["gamma"], params["beta"]           # [1, F]
    bg, wf, bf = params["bg"], params["wf"], params["bf"]   # [1,D], [1,D], [1,1]

    row_spec = pl.BlockSpec((tile_rows, e), lambda i: (i, 0))
    const = lambda shape: pl.BlockSpec(shape, lambda i, _s=shape: (0,) * len(_s))
    cparams = pltpu.CompilerParams(dimension_semantics=("parallel",))

    # --- pass 1: global BatchNorm statistics (training mode, biased var) -----
    psum = pl.pallas_call(
        functools.partial(_stats_kernel, total_rows=b * arity),
        out_shape=jax.ShapeDtypeStruct((num_tiles, 2, f), jnp.float32),
        grid=(num_tiles,),
        in_specs=[row_spec, row_spec, const((e, f)), const((e, f))],
        out_specs=pl.BlockSpec((1, 2, f), lambda i: (i, 0, 0)),
        compiler_params=cparams,
    )(roles, values, wcr, wcv)

    n = jnp.float32(b * arity)
    sums = jnp.sum(psum, axis=0)                             # [2, F]
    mean = sums[0] / n
    var = sums[1] / n - mean * mean
    inv = jax.lax.rsqrt(var + 1e-5)
    scale = (gamma * inv).astype(jnp.float32)                # [1, F]
    shift = (beta - mean * scale).astype(jnp.float32)        # [1, F]

    # --- pass 2: conv + BN + relu + g_FCN + pairwise min + f_FCN -------------
    rows = b_pad * arity
    flops = int(2 * rows * (2 * e) * f + 2 * rows * f * (2 * d))
    bytes_accessed = int(2 * rows * e * 2 + (2 * e * f + f * 2 * d) * 2 + b_pad * 4)
    cost = pl.CostEstimate(flops=flops, transcendentals=0,
                           bytes_accessed=bytes_accessed)

    out = pl.pallas_call(
        functools.partial(_nalp_kernel, arity=arity, fc_dim=d),
        out_shape=jax.ShapeDtypeStruct((b_pad, 1), jnp.float32),
        grid=(num_tiles,),
        in_specs=[row_spec, row_spec,
                  const((e, f)), const((e, f)),
                  const((1, f)), const((1, f)),
                  const((f, 2 * d)), const((1, d)),
                  const((1, d)), const((1, 1))],
        out_specs=pl.BlockSpec((tile_b, 1), lambda i: (i, 0)),
        compiler_params=cparams,
        cost_estimate=cost,
    )(roles, values, wcr, wcv, scale, shift, wg, bg, wf, bf)

    return out[:b]


def init_params(key, num_roles, num_values, emb_size, num_filters, fc_dim):
    ks = jax.random.split(key, 5)
    bound = (1.0 / emb_size) ** 0.5
    emb_roles = jax.random.uniform(ks[0], (num_roles, emb_size), jnp.float32, -bound, bound)
    emb_roles = emb_roles.at[0].set(0.0)      # padding_idx row
    emb_values = jax.random.uniform(ks[1], (num_values, emb_size), jnp.float32, -bound, bound)
    emb_values = emb_values.at[0].set(0.0)    # padding_idx row

    # conv1 weight ~ truncated_normal(std=0.1), stored as [2E, F] and split into
    # roles / values halves.  The conv bias (zeros in the reference init) is
    # omitted entirely: it cancels exactly under training-mode BatchNorm.
    wc = 0.1 * jax.random.truncated_normal(ks[2], -2.0, 2.0,
                                           (2 * emb_size, num_filters), jnp.float32)
    wc_roles, wc_values = wc[:emb_size], wc[emb_size:]

    # BatchNorm2d params (fresh): gamma=1, beta=0.
    gamma = jnp.ones((1, num_filters), jnp.float32)
    beta = jnp.zeros((1, num_filters), jnp.float32)

    # g_FCN: xavier_normal, bias=0.  Torch weight is [D, 2F]; stored transposed
    # [2F, D] and packed as [F, 2D] = [W[:, :F].T | W[:, F:].T] for one fused matmul.
    xav_g = (2.0 / (2 * num_filters + fc_dim)) ** 0.5
    wg_t = xav_g * jax.random.normal(ks[3], (2 * num_filters, fc_dim), jnp.float32)
    wg = jnp.concatenate([wg_t[:num_filters], wg_t[num_filters:]], axis=1)   # [F, 2D]
    bg = jnp.zeros((1, fc_dim), jnp.float32)

    # f_FCN: xavier_normal, bias=0.  Stored as a [1, D] row for the VPU reduce.
    xav_f = (2.0 / (fc_dim + 1)) ** 0.5
    wf = xav_f * jax.random.normal(ks[4], (1, fc_dim), jnp.float32)
    bf = jnp.zeros((1, 1), jnp.float32)

    return dict(emb_roles=emb_roles, emb_values=emb_values,
                wc_roles=wc_roles, wc_values=wc_values,
                gamma=gamma, beta=beta, wg=wg, bg=bg, wf=wf, bf=bf)


if __name__ == "__main__":
    key = jax.random.PRNGKey(0)
    emb_size, num_filters, fc_dim = 32, 128, 256
    num_roles, num_values = 8, 16
    batch, arity = 4, 2

    pkey, rkey, vkey = jax.random.split(key, 3)
    params = init_params(pkey, num_roles, num_values, emb_size, num_filters, fc_dim)

    roles = jax.random.randint(rkey, (batch, arity), 1, num_roles, dtype=jnp.int32)
    values = jax.random.randint(vkey, (batch, arity), 1, num_values, dtype=jnp.int32)
    x = jnp.zeros((batch, 2 * arity), jnp.int32)
    x = x.at[:, 0::2].set(roles).at[:, 1::2].set(values)

    out = nalp_forward(x, params, embedding_size=emb_size)
    out = jax.block_until_ready(out)
    assert out.shape == (batch, 1) and out.dtype == jnp.float32
    print("KERNEL_OK")
</pallas_src>

<mosaic_0001>
module attributes {stable_mosaic.version = 11 : i64} {
  func.func @_stats_kernel(%arg0: i32, %arg1: memref<32x32xbf16, #tpu.memory_space<vmem>>, %arg2: memref<32x32xbf16, #tpu.memory_space<vmem>>, %arg3: memref<32x128xbf16, #tpu.memory_space<vmem>>, %arg4: memref<32x128xbf16, #tpu.memory_space<vmem>>, %arg5: memref<1x2x128xf32, #tpu.memory_space<vmem>>) attributes {dimension_semantics = [#tpu.dimension_semantics<parallel>], iteration_bounds = array<i64: 1>, scalar_prefetch = 0 : i64, scratch_operands = 0 : i64, tpu.core_type = #tpu.core_type<tc>, window_params = [{transform_indices = @transform_0, window_bounds = array<i64: 32, 32>}, {transform_indices = @transform_1, window_bounds = array<i64: 32, 32>}, {pipeline_mode = #tpu.pipeline_mode<synchronous>, transform_indices = @transform_2, window_bounds = array<i64: 32, 128>}, {pipeline_mode = #tpu.pipeline_mode<synchronous>, transform_indices = @transform_3, window_bounds = array<i64: 32, 128>}, {transform_indices = @transform_4, window_bounds = array<i64: 1, 2, 128>}]} {
    %c0 = arith.constant 0 : index
    %c0_0 = arith.constant 0 : index
    %0 = vector.load %arg1[%c0, %c0_0] : memref<32x32xbf16, #tpu.memory_space<vmem>>, vector<32x32xbf16>
    %c0_1 = arith.constant 0 : index
    %c0_2 = arith.constant 0 : index
    %1 = vector.load %arg2[%c0_1, %c0_2] : memref<32x32xbf16, #tpu.memory_space<vmem>>, vector<32x32xbf16>
    %c0_3 = arith.constant 0 : index
    %c0_4 = arith.constant 0 : index
    %2 = vector.load %arg3[%c0_3, %c0_4] : memref<32x128xbf16, #tpu.memory_space<vmem>>, vector<32x128xbf16>
    %c0_5 = arith.constant 0 : index
    %c0_6 = arith.constant 0 : index
    %3 = vector.load %arg4[%c0_5, %c0_6] : memref<32x128xbf16, #tpu.memory_space<vmem>>, vector<32x128xbf16>
    %cst = arith.constant dense<0.000000e+00> : vector<32x128xf32>
    %4 = tpu.matmul %0, %2, %cst {dimension_numbers = #tpu.dot_dimension_numbers<[1], [0], [0], [1], [0, 0, 1, 1], [], []>} : vector<32x32xbf16>, vector<32x128xbf16>, vector<32x128xf32> -> vector<32x128xf32>
    %cst_7 = arith.constant dense<0.000000e+00> : vector<32x128xf32>
    %5 = tpu.matmul %1, %3, %cst_7 {dimension_numbers = #tpu.dot_dimension_numbers<[1], [0], [0], [1], [0, 0, 1, 1], [], []>} : vector<32x32xbf16>, vector<32x128xbf16>, vector<32x128xf32> -> vector<32x128xf32>
    %6 = arith.addf %4, %5 : vector<32x128xf32>
    %c32_i32 = arith.constant 32 : i32
    %7 = arith.muli %arg0, %c32_i32 : i32
    %8 = tpu.iota {dimensions = array<i32: 0>} : vector<32x1xi32>
    %9 = vector.broadcast %7 : i32 to vector<32x1xi32>
    %10 = arith.addi %9, %8 : vector<32x1xi32>
    %c8_i32 = arith.constant 8 : i32
    %11 = vector.broadcast %c8_i32 : i32 to vector<32x1xi32>
    %12 = arith.cmpi slt, %10, %11 : vector<32x1xi32>
    %13 = arith.extui %12 : vector<32x1xi1> to vector<32x1xi32>
    %14 = arith.sitofp %13 : vector<32x1xi32> to vector<32x1xf32>
    %15 = vector.broadcast %14 : vector<32x1xf32> to vector<32x128xf32>
    %16 = arith.mulf %6, %15 : vector<32x128xf32>
    %cst_8 = arith.constant dense<0.000000e+00> : vector<128xf32>
    %17 = vector.multi_reduction <add>, %16, %cst_8 [0] : vector<32x128xf32> to vector<128xf32>
    %18 = vector.shape_cast %17 : vector<128xf32> to vector<1x128xf32>
    %19 = arith.mulf %16, %6 : vector<32x128xf32>
    %cst_9 = arith.constant dense<0.000000e+00> : vector<128xf32>
    %20 = vector.multi_reduction <add>, %19, %cst_9 [0] : vector<32x128xf32> to vector<128xf32>
    %21 = vector.shape_cast %20 : vector<128xf32> to vector<1x128xf32>
    %22 = tpu.concatenate %18, %21 in 0 : vector<1x128xf32>, vector<1x128xf32> -> vector<2x128xf32>
    %c0_10 = arith.constant 0 : index
    %c0_11 = arith.constant 0 : index
    %c0_12 = arith.constant 0 : index
    %23 = vector.load %arg5[%c0_10, %c0_11, %c0_12] : memref<1x2x128xf32, #tpu.memory_space<vmem>>, vector<1x2x128xf32>
    %24 = vector.shape_cast %23 : vector<1x2x128xf32> to vector<2x128xf32>
    %25 = vector.shape_cast %22 : vector<2x128xf32> to vector<1x2x128xf32>
    tpu.vector_store %arg5[%c0_10, %c0_11, %c0_12], %25 {strides = array<i32>} : memref<1x2x128xf32, #tpu.memory_space<vmem>>, vector<1x2x128xf32>,
    return
  }
  func.func @transform_0(%arg0: i32) -> (i32, i32) {
    %c0_i32 = arith.constant 0 : i32
    %c0_i32_0 = arith.constant 0 : i32
    return %arg0, %c0_i32 : i32, i32
  }
  func.func @transform_1(%arg0: i32) -> (i32, i32) {
    %c0_i32 = arith.constant 0 : i32
    %c0_i32_0 = arith.constant 0 : i32
    return %arg0, %c0_i32 : i32, i32
  }
  func.func @transform_2(%arg0: i32) -> (i32, i32) {
    %c0_i32 = arith.constant 0 : i32
    %c0_i32_0 = arith.constant 0 : i32
    %c0_i32_1 = arith.constant 0 : i32
    return %c0_i32, %c0_i32_0 : i32, i32
  }
  func.func @transform_3(%arg0: i32) -> (i32, i32) {
    %c0_i32 = arith.constant 0 : i32
    %c0_i32_0 = arith.constant 0 : i32
    %c0_i32_1 = arith.constant 0 : i32
    return %c0_i32, %c0_i32_0 : i32, i32
  }
  func.func @transform_4(%arg0: i32) -> (i32, i32, i32) {
    %c0_i32 = arith.constant 0 : i32
    %c0_i32_0 = arith.constant 0 : i32
    %c0_i32_1 = arith.constant 0 : i32
    return %arg0, %c0_i32, %c0_i32_0 : i32, i32, i32
  }
}

</mosaic_0001>

<bundles_post_ra>
// kernel: tpu_custom_call.1
= control target key start
LH: loop header
LB: loop body
LE: loop exit
PB: predicated region body
PF: predicated region fallthrough
CT: control target
= control target key end

     0   :  { %9 = vsyncpa [#allocation3], 0  ;;  %s605_s0 = inlined_call_operand.hbm [shape: bf16[32,32], index: 0, kind: input, shape index: {}]   ;;  %s606_s1 = inlined_call_operand.hbm [shape: bf16[32,32], index: 1, kind: input, shape index: {}]   ;;  %s607_s2 = inlined_call_operand.hbm [shape: bf16[32,128], index: 2, kind: input, shape index: {}]   ;;  %s608_s3 = inlined_call_operand.hbm [shape: bf16[32,128], index: 3, kind: input, shape index: {}]   ;;  %s609_s4 = inlined_call_operand.hbm [shape: f32[1,2,128], index: 4, kind: output, shape index: {}]  }
   0x1   :  { %10 = vsyncpa [#allocation6], 0 }
   0x2   :  { %11 = vsyncpa [#allocation9], 0 }
   0x3   :  { %12 = vsyncpa [#allocation4], 0  ;;  %s487_s15 = smov [#allocation5]   ;;  %s488_s17 = smov [#allocation2]  }
   0x4   :  { %s30_s16 = sshll.u32 %s487_s15, 4  ;;  %s18_s18 = sshll.u32 %s488_s17, 4  ;;  %s31_s16 = int_to_ptr.vmem [resolvable:$true] %s30_s16  ;;  %s519_s18 = int_to_ptr.vmem [resolvable:$true] %s18_s18 }
   0x5   :  { %s369_s21 = scalar_lea.hbm %s606_s1, 256 }
   0x6   :  { %p370_p0 = scmp.ne.s32.totalorder %s606_s1, %s369_s21  ;;  %p373_p1 = scmp.lt.u32.totalorder %s369_s21, %s606_s1 }
   0x8   :  { %p375_p2 = pnand %p373_p1, %p370_p0 }
   0xa   :  { %378 = shalt.err (!%p375_p2)
}
   0xb   :  { %s379_s26 = scalar_lea.vmem %s31_s16, 256  ;;  %p384_p4 = scmp.lt.s32.totalorder %s31_s16, %s31_s16 }
   0xc   :  { %p380_p3 = scmp.ne.s32.totalorder %s31_s16, %s379_s26  ;;  %p385_p5 = scmp.lt.s32.totalorder %s379_s26, %s379_s26 }
   0xe   :  { %p386_p6 = por %p385_p5, %p384_p4 }
  0x10   :  { %p387_p7 = pnand %p386_p6, %p380_p3 }
  0x12   :  { %390 = shalt.err (!%p387_p7)
}
  0x13   :  { %s489_s27 = smov 64   ;;  %s490_s28 = smov 4  }
  0x14   :  { %36 = dma.hbm_to_vmem [thread:$0]  %s606_s1, 256, %s31_s16, [#allocation6], %s489_s27, %s489_s27, %s490_s28  }
  0x15   :  { %s391_s7 = scalar_lea.hbm %s605_s0, 256 }
  0x16   :  { %p392_p8 = scmp.ne.s32.totalorder %s605_s0, %s391_s7  ;;  %p395_p9 = scmp.lt.u32.totalorder %s391_s7, %s605_s0 }
  0x18   :  { %p397_p10 = pnand %p395_p9, %p392_p8 }
  0x1a   :  { %400 = shalt.err (!%p397_p10)
}
  0x1b   :  { %s401_s12 = scalar_lea.vmem %s519_s18, 256  ;;  %p406_p12 = scmp.lt.s32.totalorder %s519_s18, %s519_s18 }
  0x1c   :  { %p402_p11 = scmp.ne.s32.totalorder %s519_s18, %s401_s12  ;;  %p407_p13 = scmp.lt.s32.totalorder %s401_s12, %s401_s12 }
  0x1e   :  { %p408_p0 = por %p407_p13, %p406_p12 }
  0x20   :  { %p409_p1 = pnand %p408_p0, %p402_p11 }
  0x22   :  { %412 = shalt.err (!%p409_p1)
}
  0x23   :  { %24 = dma.hbm_to_vmem [thread:$0]  %s605_s0, 256, %s519_s18, [#allocation3], %s489_s27, %s489_s27, %s490_s28  }
  0x24   :  { %s491_s14 = smov [#allocation7]   ;;  %s492_s16 = smov [#allocation8]  }
  0x25   :  { %s42_s15 = sshll.u32 %s491_s14, 4  ;;  %s54_s17 = sshll.u32 %s492_s16, 4  ;;  %s43_s15 = int_to_ptr.vmem [resolvable:$true] %s42_s15  ;;  %s556_s17 = int_to_ptr.vmem [resolvable:$true] %s54_s17 }
  0x26   :  { %s413_s21 = scalar_lea.hbm %s607_s2, 256 }
  0x27   :  { %p414_p2 = scmp.ne.s32.totalorder %s607_s2, %s413_s21  ;;  %p417_p3 = scmp.lt.u32.totalorder %s413_s21, %s607_s2 }
  0x29   :  { %p419_p4 = pnand %p417_p3, %p414_p2 }
  0x2b   :  { %422 = shalt.err (!%p419_p4)
}
  0x2c   :  { %s423_s0 = scalar_lea.vmem %s43_s15, 256  ;;  %p428_p6 = scmp.lt.s32.totalorder %s43_s15, %s43_s15 }
  0x2d   :  { %p424_p5 = scmp.ne.s32.totalorder %s43_s15, %s423_s0  ;;  %p429_p7 = scmp.lt.s32.totalorder %s423_s0, %s423_s0 }
  0x2f   :  { %p430_p8 = por %p429_p7, %p428_p6 }
  0x31   :  { %p431_p9 = pnand %p430_p8, %p424_p5 }
  0x33   :  { %434 = shalt.err (!%p431_p9)
}
  0x34   :  { %48 = dma.hbm_to_vmem [thread:$0]  %s607_s2, 256, %s43_s15, [#allocation6], %s489_s27, %s489_s27, %s490_s28  }
  0x35   :  { %s435_s5 = scalar_lea.hbm %s608_s3, 256 }
  0x36   :  { %p436_p10 = scmp.ne.s32.totalorder %s608_s3, %s435_s5  ;;  %p439_p11 = scmp.lt.u32.totalorder %s435_s5, %s608_s3 }
  0x38   :  { %p441_p12 = pnand %p439_p11, %p436_p10 }
  0x3a   :  { %444 = shalt.err (!%p441_p12)
}
  0x3b   :  { %s445_s10 = scalar_lea.vmem %s556_s17, 256  ;;  %p450_p0 = scmp.lt.s32.totalorder %s556_s17, %s556_s17 }
  0x3c   :  { %p446_p13 = scmp.ne.s32.totalorder %s556_s17, %s445_s10  ;;  %p451_p1 = scmp.lt.s32.totalorder %s445_s10, %s445_s10 }
  0x3e   :  { %p452_p2 = por %p451_p1, %p450_p0 }
  0x40   :  { %p453_p3 = pnand %p452_p2, %p446_p13 }
  0x42   :  { %456 = shalt.err (!%p453_p3)
}
  0x43   :  { %60 = dma.hbm_to_vmem [thread:$0]  %s608_s3, 256, %s556_s17, [#allocation9], %s489_s27, %s489_s27, %s490_s28  }
  0x44   :  { %479 = dma.done.wait [#allocation3], 256  }
  0x45   :  { %480 = vsyncadd [#allocation3], 4294967040 }
  0x46   :  { %481 = dma.done.wait [#allocation6], 512  }
  0x47   :  { %482 = vsyncadd [#allocation6], 4294966784 }
  0x48   :  { %483 = dma.done.wait [#allocation9], 256  }
  0x49   :  { %484 = vsyncadd [#allocation9], 4294967040  ;;  %v361_v0 = vld [vmem:[#allocation8] sm:$0xff]   ;;  %v362_v1 = vld [vmem:[#allocation7] sm:$0xff]   ;;  %vm112_vm0 = vcmask 261120   ;;  %s493_s3 = smov [#allocation10]  }
  0x4a   :  { %334 = vmatprep.subr.bf16.mxu1 %v361_v0  ;;  %v363_v2 = vld [vmem:[#allocation8 + $0x8] sm:$0xff]   ;;  %342 = vmatprep.subr.bf16.mxu0 %v362_v1  ;;  %v364_v3 = vld [vmem:[#allocation7 + $0x8] sm:$0xff]   ;;  %v365_v4 = vld [vmem:[#allocation5] sm:$0xff]   ;;  %s303_s27 = sshll.u32 %s493_s3, 4  ;;  %vm294_vm1 = vcmask 1040384   ;;  %s304_s27 = int_to_ptr.vmem [resolvable:$true] %s303_s27 }
  0x4b   :  { %335 = vmatpush3.bf16.msra.mxu1 %v361_v0  ;;  %343 = vmatpush3.bf16.msra.mxu0 %v362_v1  ;;  %v366_v5 = vld [vmem:[#allocation2] sm:$0xff]   ;;  %v367_v6 = vld [vmem:[#allocation5 + $0x8] sm:$0xff]   ;;  %v368_v7 = vld [vmem:[#allocation2 + $0x8] sm:$0xff]   ;;  %s457_s28 = scalar_lea.vmem %s304_s27, 32  ;;  %p462_p5 = scmp.lt.s32.totalorder %s304_s27, %s304_s27 }
  0x4c   :  { %336 = vmatprep.subr.bf16.mxu1 %v363_v2  ;;  %344 = vmatprep.subr.bf16.mxu0 %v364_v3  ;;  %p458_p4 = scmp.ne.s32.totalorder %s304_s27, %s457_s28  ;;  %p463_p6 = scmp.lt.s32.totalorder %s457_s28, %s457_s28 }
  0x4d   :  { %338 = vmatprep.mubr.msk.bf16.mxu1 %vm112_vm0, %v365_v4  ;;  %346 = vmatprep.mubr.msk.bf16.mxu0 %vm112_vm0, %v366_v5 }
  0x4e   :  { %p464_p7 = por %p463_p6, %p462_p5 }
  0x4f   :  { %337 = vmatpush3.bf16.msra.mxu1 %v363_v2  ;;  %345 = vmatpush3.bf16.msra.mxu0 %v364_v3 }
  0x50   :  { %p465_p8 = pnand %p464_p7, %p458_p4 }
  0x52   :  { %339 = vmatmul.mubr.msk.bf16.vlgmr.msra.gmra.mrb[0].mxu1 %vm112_vm0, %v367_v6  ;;  %347 = vmatmul.mubr.msk.bf16.vlgmr.msra.gmra.mrb[0].mxu0 %vm112_vm0, %v368_v7 }
 0x125   :  { %v340_v8 = vpop.f32.mrb[0].mxu1  ;;  %v348_v9 = vpop.f32.mrb[0].mxu0 }
 0x126   :  { %v153_v10 = vpop.f32.mrb[1].mxu1  ;;  %v239_v11 = vadd.f32 %v348_v9, %v340_v8  ;;  %v230_v12 = vpop.f32.mrb[1].mxu0 }
 0x127   :  { %v341_v13 = vpop.f32.mrb[2].mxu1  ;;  %v231_v14 = vadd.f32 %v230_v12, %v153_v10  ;;  %v349_v15 = vpop.f32.mrb[2].mxu0 }
 0x128   :  { %v156_v16 = vpop.f32.mrb[3].mxu1  ;;  %v242_v17 = vadd.f32 %v349_v15, %v341_v13  ;;  %v233_v18 = vpop.f32.mrb[3].mxu0  ;;  %v270_v20 = vmul.f32 0.0, %v239_v11 }
 0x129   :  { %v234_v19 = vadd.f32 %v233_v18, %v156_v16  ;;  %v281_v22 = vmul.f32 %v231_v14, %v231_v14 }
 0x12a   :  { %v271_v23 = vmul.f32 0.0, %v242_v17  ;;  %v283_v26 = vmul.f32 %v270_v20, %v239_v11 }
 0x12b   :  { %v269_v21 = vmul.f32 0.0, %v234_v19 }
 0x12c   :  { %v284_v29 = vmul.f32 %v271_v23, %v242_v17 }
 0x12d   :  { %v272_v24 = vadd.f32 %v269_v21, %v231_v14  ;;  %v282_v25 = vmul.f32 %v269_v21, %v234_v19 }
 0x12f   :  { %v273_v27 = vadd.f32 %v272_v24, %v270_v20  ;;  %v285_v28 = vadd.f32 %v282_v25, %v281_v22 }
 0x131   :  { %v274_v30 = vadd.f32 %v273_v27, %v271_v23  ;;  %v286_v31 = vadd.f32 %v285_v28, %v283_v26 }
 0x133   :  { %v275_v32 = vrot.slane %v274_v30, 4  ;;  %v287_v33 = vadd.f32 %v286_v31, %v284_v29 }
 0x135   :  { %v276_v34 = vadd.f32 %v275_v32, %v274_v30  ;;  %v288_v35 = vrot.slane %v287_v33, 4 }
 0x137   :  { %v289_v36 = vadd.f32 %v288_v35, %v287_v33  ;;  %v277_v37 = vrot.slane %v276_v34, 2 }
 0x139   :  { %v278_v38 = vadd.f32 %v277_v37, %v276_v34  ;;  %v290_v39 = vrot.slane %v289_v36, 2 }
 0x13b   :  { %v279_v40 = vrot.slane %v278_v38, 1  ;;  %v291_v41 = vadd.f32 %v290_v39, %v289_v36 }
 0x13d   :  { %v292_v42 = vrot.slane %v291_v41, 1  ;;  %v280_v43 = vadd.f32 %v279_v40, %v278_v38 }
 0x13f   :  { %v293_v44 = vadd.f32 %v292_v42, %v291_v41 }
 0x141   :  { %v295_v45 = vsel %vm294_vm1, %v280_v43, %v293_v44 }
 0x142   :  { %296 = vst [vmem:[#allocation10] sm:$0x3] %v295_v45 }
 0x143   :  { %468 = shalt.err (!%p465_p8)
}
 0x144   :  { %s469_s13 = scalar_lea.hbm %s609_s4, 32 }
 0x145   :  { %p470_p9 = scmp.ne.s32.totalorder %s609_s4, %s469_s13  ;;  %p473_p10 = scmp.lt.u32.totalorder %s469_s13, %s609_s4 }
 0x147   :  { %p475_p11 = pnand %p473_p10, %p470_p9 }
 0x149   :  { %478 = shalt.err (!%p475_p11)
}
 0x14a   :  { %306 = dma.vmem_to_hbm [thread:$0]  %s304_s27, 32, %s609_s4, [#allocation4]  }
 0x14b   :  { %485 = dma.done.wait [#allocation4], 32  }
 0x14c   :  { %486 = vsyncadd [#allocation4], 4294967264 }
 0x14d   :  { %310 = vsyncpa [#allocation3], 1 }
 0x14e   :  { %311 = vsyncpa [#allocation6], 1 }
 0x14f   :  { %312 = vsyncpa [#allocation9], 1 }
 0x150   :  { %313 = vsyncpa [#allocation4], 1 }

</bundles_post_ra>
